<compile_context>
chip_gen: v7x
topology: tpu7x:2x2x1
jax: 0.10.0
libtpu: 0.0.40
codegen_flags: <defaults>
</compile_context>

<pallas_src>
import math
import jax
import jax.numpy as jnp
from jax.experimental import pallas as pl
from jax.experimental.pallas import tpu as pltpu


def _ffn_kernel(x_ref, w1_ref, b1_ref, w2_ref, b2_ref, o_ref, acc_ref):
    # x_ref:  (tm, d_model_p)
    # w1_ref: (d_model_p, tk_ff), b1_ref: (1, tk_ff)
    # w2_ref: (tk_ff, d_model_p), b2_ref: (1, d_model_p)
    # acc_ref: (tm, d_model_p) f32 accumulator (persists across the k axis)
    k = pl.program_id(1)
    nk = pl.num_programs(1)

    @pl.when(k == 0)
    def _():
        acc_ref[...] = jnp.zeros_like(acc_ref)

    # Linear 1 (MXU, native operand dtype, f32 accumulate) + bias + ReLU.
    h = jnp.dot(x_ref[...], w1_ref[...], preferred_element_type=jnp.float32)
    h = jnp.maximum(h + b1_ref[...].astype(jnp.float32), 0.0)

    # Dropout: identity (eval mode).

    # Linear 2 chunk (MXU), accumulated in f32.
    partial = jnp.dot(h.astype(w2_ref.dtype), w2_ref[...],
                      preferred_element_type=jnp.float32)
    total = acc_ref[...] + partial

    @pl.when(k < nk - 1)
    def _():
        acc_ref[...] = total        # store only when another k step will read it

    @pl.when(k == nk - 1)
    def _():
        # Last step: write out directly — no acc store-then-reload.
        o_ref[...] = (total + b2_ref[...].astype(jnp.float32)).astype(o_ref.dtype)


def _round_up(x, m):
    return ((x + m - 1) // m) * m


def _device_vmem_bytes():
    try:
        return int(pltpu.get_tpu_info().vmem_capacity_bytes)
    except Exception:
        return 128 * 1024 * 1024   # conservative default (v5e/v6e class)


def _tile_footprint_bytes(tm, tk_ff, d_model_p, itemsize, out_itemsize):
    """VMEM residency for the chosen tiles (double-buffered I/O + f32 acc + weights)."""
    x_tile = 2 * tm * d_model_p * itemsize
    o_tile = 2 * tm * d_model_p * out_itemsize
    acc = tm * d_model_p * 4
    w1 = 2 * d_model_p * tk_ff * itemsize
    b1 = 2 * tk_ff * itemsize
    w2 = 2 * tk_ff * d_model_p * itemsize
    b2 = 2 * d_model_p * itemsize
    return x_tile + o_tile + acc + w1 + b1 + w2 + b2


def _pick_tiles(n_rows, d_model_p, d_ff, itemsize, out_itemsize, tm=None, tk_ff=None):
    """Generation-aware tile selection + VMEM limit derived from the real footprint."""
    vmem_cap = _device_vmem_bytes()
    if vmem_cap >= 96 * 1024 * 1024:
        # v5e / v6e class: 128 MiB physical VMEM — go big on tm (arithmetic intensity)
        # and tk_ff (fewer accumulator RMW passes).
        tm_sel, tk_sel = 1024, 1024
        budget = 100 * 1024 * 1024
    else:
        # v7x class: 64 MiB physical VMEM — keep total residency <= ~48 MiB.
        tm_sel, tk_sel = 512, 512
        budget = 48 * 1024 * 1024
    if tm is not None:
        tm_sel = tm
    if tk_ff is not None:
        tk_sel = tk_ff

    # Row granularity: 8 sublanes for f32, 16 for bf16/f16 (2 rows/sublane), 32 for int8.
    row_mult = 8 if itemsize >= 4 else (16 if itemsize == 2 else 32)

    tk_sel = min(tk_sel, _round_up(d_ff, 128))
    tm_sel = min(_round_up(tm_sel, row_mult), _round_up(n_rows, row_mult))

    # Shrink tiles until the footprint fits the per-generation budget.
    while (_tile_footprint_bytes(tm_sel, tk_sel, d_model_p, itemsize, out_itemsize)
           > budget) and (tm_sel > row_mult or tk_sel > 128):
        if tm_sel >= tk_sel and tm_sel > row_mult:
            tm_sel = _round_up(max(row_mult, tm_sel // 2), row_mult)
        elif tk_sel > 128:
            tk_sel = _round_up(max(128, tk_sel // 2), 128)
        else:
            break

    footprint = _tile_footprint_bytes(tm_sel, tk_sel, d_model_p, itemsize, out_itemsize)
    vmem_limit = min(budget, max(int(footprint * 1.15) + (4 << 20), 32 << 20))
    return tm_sel, tk_sel, vmem_limit


def feed_forward(x, w1, b1, w2, b2, *, tm=None, tk_ff=None):
    """x: (batch, seq, d_model); w1: (d_model, d_ff); w2: (d_ff, d_model)."""
    B, S, d_model = x.shape
    d_ff = w1.shape[1]
    N = B * S
    dtype = x.dtype
    itemsize = jnp.dtype(dtype).itemsize

    # Lane-dense / MXU-friendly padded sizes (zero padding is mathematically exact).
    d_model_p = _round_up(d_model, 128)
    tm, tk_ff, vmem_limit = _pick_tiles(N, d_model_p, d_ff, itemsize, itemsize,
                                        tm=tm, tk_ff=tk_ff)
    d_ff_p = _round_up(d_ff, tk_ff)
    n_p = _round_up(N, tm)

    x2 = jnp.pad(x.reshape(N, d_model), ((0, n_p - N), (0, d_model_p - d_model)))
    w1_p = jnp.pad(w1, ((0, d_model_p - d_model), (0, d_ff_p - d_ff)))
    b1_p = jnp.pad(b1, (0, d_ff_p - d_ff)).reshape(1, d_ff_p)
    w2_p = jnp.pad(w2, ((0, d_ff_p - d_ff), (0, d_model_p - d_model)))
    b2_p = jnp.pad(b2, (0, d_model_p - d_model)).reshape(1, d_model_p)

    grid = (n_p // tm, d_ff_p // tk_ff)
    n_row_tiles = grid[0]

    # Weights/biases are re-streamed from HBM once per row tile — count them as such.
    weight_bytes = (w1_p.size + b1_p.size + w2_p.size + b2_p.size) * itemsize
    cost = pl.CostEstimate(
        flops=4 * n_p * d_model_p * d_ff_p,          # two matmuls: 2*N*dm*dff each
        transcendentals=0,
        bytes_accessed=(x2.size + n_p * d_model_p) * itemsize
                       + n_row_tiles * weight_bytes,
    )

    out2 = pl.pallas_call(
        _ffn_kernel,
        out_shape=jax.ShapeDtypeStruct((n_p, d_model_p), dtype),
        grid_spec=pltpu.PrefetchScalarGridSpec(
            num_scalar_prefetch=0,
            grid=grid,
            in_specs=[
                pl.BlockSpec((tm, d_model_p), lambda i, k: (i, 0)),    # x row-tile
                pl.BlockSpec((d_model_p, tk_ff), lambda i, k: (0, k)), # w1 chunk
                pl.BlockSpec((1, tk_ff), lambda i, k: (0, k)),         # b1 chunk
                pl.BlockSpec((tk_ff, d_model_p), lambda i, k: (k, 0)), # w2 chunk
                pl.BlockSpec((1, d_model_p), lambda i, k: (0, 0)),     # b2
            ],
            out_specs=pl.BlockSpec((tm, d_model_p), lambda i, k: (i, 0)),
            scratch_shapes=[pltpu.VMEM((tm, d_model_p), jnp.float32)],
        ),
        compiler_params=pltpu.CompilerParams(
            dimension_semantics=("parallel", "arbitrary"),
            vmem_limit_bytes=vmem_limit,
        ),
        cost_estimate=cost,
    )(x2, w1_p, b1_p, w2_p, b2_p)

    return out2[:N, :d_model].reshape(B, S, d_model)


def init_params(key, d_model, d_ff):
    """Deterministic init mimicking nn.Linear's default uniform(-1/sqrt(in), 1/sqrt(in))."""
    k1, k2, k3, k4 = jax.random.split(key, 4)
    bound1 = 1.0 / math.sqrt(d_model)
    bound2 = 1.0 / math.sqrt(d_ff)
    # Stored as (in, out) — i.e. PyTorch weight transposed.
    w1 = jax.random.uniform(k1, (d_model, d_ff), jnp.float32, -bound1, bound1)
    b1 = jax.random.uniform(k2, (d_ff,), jnp.float32, -bound1, bound1)
    w2 = jax.random.uniform(k3, (d_ff, d_model), jnp.float32, -bound2, bound2)
    b2 = jax.random.uniform(k4, (d_model,), jnp.float32, -bound2, bound2)
    return w1, b1, w2, b2


if __name__ == "__main__":
    key = jax.random.PRNGKey(0)
    batch, seq = 2, 8
    d_ff = 1024  # module default

    # f32 checks: d_model=32 exercises the lane-padding path, d_model=128 the lane-dense path.
    for d_model in (32, 128):
        kx, kp = jax.random.split(jax.random.fold_in(key, d_model))
        x = jax.random.normal(kx, (batch, seq, d_model), jnp.float32)
        w1, b1, w2, b2 = init_params(kp, d_model, d_ff)
        out = jax.block_until_ready(feed_forward(x, w1, b1, w2, b2))
        ref = jnp.maximum(x @ w1 + b1, 0.0) @ w2 + b2
        assert out.shape == (batch, seq, d_model)
        assert jnp.allclose(out, ref, atol=1e-3, rtol=1e-3), f"f32 mismatch (d_model={d_model})"

    # bf16 path: operands go straight to the MXU, f32 accumulation inside.
    d_model = 128
    kx, kp = jax.random.split(jax.random.fold_in(key, 999))
    x = jax.random.normal(kx, (batch, seq, d_model), jnp.float32)
    w1, b1, w2, b2 = init_params(kp, d_model, d_ff)
    out_bf16 = jax.block_until_ready(
        feed_forward(x.astype(jnp.bfloat16), w1.astype(jnp.bfloat16),
                     b1.astype(jnp.bfloat16), w2.astype(jnp.bfloat16),
                     b2.astype(jnp.bfloat16)))
    ref = jnp.maximum(x @ w1 + b1, 0.0) @ w2 + b2
    assert out_bf16.dtype == jnp.bfloat16
    assert jnp.allclose(out_bf16.astype(jnp.float32), ref, atol=1e-1, rtol=1e-1), "bf16 mismatch"

    # Exercise a multi-row-tile / multi-k-step grid (small per-dim sizes, forced tiles).
    kx, kp = jax.random.split(jax.random.fold_in(key, 1234))
    x = jax.random.normal(kx, (4, 64, 128), jnp.float32)         # N=256 rows
    w1, b1, w2, b2 = init_params(kp, 128, d_ff)
    out = jax.block_until_ready(feed_forward(x, w1, b1, w2, b2, tm=128, tk_ff=256))
    ref = jnp.maximum(x @ w1 + b1, 0.0) @ w2 + b2
    assert jnp.allclose(out, ref, atol=1e-3, rtol=1e-3), "multi-tile mismatch"

    print("KERNEL_OK")
</pallas_src>

<mosaic_0001>
module attributes {stable_mosaic.version = 11 : i64} {
  func.func @_ffn_kernel(%arg0: i32, %arg1: i32, %arg2: memref<16x128xf32, #tpu.memory_space<vmem>>, %arg3: memref<128x1024xf32, #tpu.memory_space<vmem>>, %arg4: memref<1x1024xf32, #tpu.memory_space<vmem>>, %arg5: memref<1024x128xf32, #tpu.memory_space<vmem>>, %arg6: memref<1x128xf32, #tpu.memory_space<vmem>>, %arg7: memref<16x128xf32, #tpu.memory_space<vmem>>, %arg8: memref<16x128xf32, #tpu.memory_space<vmem>>) attributes {dimension_semantics = [#tpu.dimension_semantics<parallel>, #tpu.dimension_semantics<arbitrary>], iteration_bounds = array<i64: 1, 1>, scalar_prefetch = 0 : i64, scratch_operands = 1 : i64, tpu.core_type = #tpu.core_type<tc>, window_params = [{transform_indices = @transform_0, window_bounds = array<i64: 16, 128>}, {transform_indices = @transform_1, window_bounds = array<i64: 128, 1024>}, {transform_indices = @transform_2, window_bounds = array<i64: 1, 1024>}, {transform_indices = @transform_3, window_bounds = array<i64: 1024, 128>}, {pipeline_mode = #tpu.pipeline_mode<synchronous>, transform_indices = @transform_4, window_bounds = array<i64: 1, 128>}, {transform_indices = @transform_5, window_bounds = array<i64: 16, 128>}]} {
    %c0_i32 = arith.constant 0 : i32
    %0 = arith.cmpi eq, %arg1, %c0_i32 : i32
    %1 = arith.extui %0 : i1 to i32
    %c0_i32_0 = arith.constant 0 : i32
    %2 = arith.cmpi ne, %1, %c0_i32_0 : i32
    scf.if %2 {
      %cst_16 = arith.constant 0.000000e+00 : f32
      %21 = vector.broadcast %cst_16 : f32 to vector<16x128xf32>
      %c0_17 = arith.constant 0 : index
      %c0_18 = arith.constant 0 : index
      %22 = vector.load %arg8[%c0_17, %c0_18] : memref<16x128xf32, #tpu.memory_space<vmem>>, vector<16x128xf32>
      tpu.vector_store %arg8[%c0_17, %c0_18], %21 {strides = array<i32>} : memref<16x128xf32, #tpu.memory_space<vmem>>, vector<16x128xf32>,
    } else {
    }
    %c0 = arith.constant 0 : index
    %c0_1 = arith.constant 0 : index
    %3 = vector.load %arg2[%c0, %c0_1] : memref<16x128xf32, #tpu.memory_space<vmem>>, vector<16x128xf32>
    %c0_2 = arith.constant 0 : index
    %c0_3 = arith.constant 0 : index
    %4 = vector.load %arg3[%c0_2, %c0_3] : memref<128x1024xf32, #tpu.memory_space<vmem>>, vector<128x1024xf32>
    %cst = arith.constant dense<0.000000e+00> : vector<16x1024xf32>
    %5 = tpu.matmul %3, %4, %cst {dimension_numbers = #tpu.dot_dimension_numbers<[1], [0], [0], [1], [0, 0, 1, 1], [], []>} : vector<16x128xf32>, vector<128x1024xf32>, vector<16x1024xf32> -> vector<16x1024xf32>
    %c0_4 = arith.constant 0 : index
    %c0_5 = arith.constant 0 : index
    %6 = vector.load %arg4[%c0_4, %c0_5] : memref<1x1024xf32, #tpu.memory_space<vmem>>, vector<1x1024xf32>
    %7 = vector.broadcast %6 : vector<1x1024xf32> to vector<16x1024xf32>
    %8 = arith.addf %5, %7 : vector<16x1024xf32>
    %cst_6 = arith.constant 0.000000e+00 : f32
    %9 = vector.broadcast %cst_6 : f32 to vector<16x1024xf32>
    %10 = arith.maximumf %8, %9 : vector<16x1024xf32>
    %c0_7 = arith.constant 0 : index
    %c0_8 = arith.constant 0 : index
    %11 = vector.load %arg5[%c0_7, %c0_8] : memref<1024x128xf32, #tpu.memory_space<vmem>>, vector<1024x128xf32>
    %cst_9 = arith.constant dense<0.000000e+00> : vector<16x128xf32>
    %12 = tpu.matmul %10, %11, %cst_9 {dimension_numbers = #tpu.dot_dimension_numbers<[1], [0], [0], [1], [0, 0, 1, 1], [], []>} : vector<16x1024xf32>, vector<1024x128xf32>, vector<16x128xf32> -> vector<16x128xf32>
    %c0_10 = arith.constant 0 : index
    %c0_11 = arith.constant 0 : index
    %13 = vector.load %arg8[%c0_10, %c0_11] : memref<16x128xf32, #tpu.memory_space<vmem>>, vector<16x128xf32>
    %14 = arith.addf %13, %12 : vector<16x128xf32>
    %c0_i32_12 = arith.constant 0 : i32
    %15 = arith.cmpi slt, %arg1, %c0_i32_12 : i32
    %16 = arith.extui %15 : i1 to i32
    %c0_i32_13 = arith.constant 0 : i32
    %17 = arith.cmpi ne, %16, %c0_i32_13 : i32
    scf.if %17 {
      %c0_16 = arith.constant 0 : index
      %c0_17 = arith.constant 0 : index
      %21 = vector.load %arg8[%c0_16, %c0_17] : memref<16x128xf32, #tpu.memory_space<vmem>>, vector<16x128xf32>
      tpu.vector_store %arg8[%c0_16, %c0_17], %14 {strides = array<i32>} : memref<16x128xf32, #tpu.memory_space<vmem>>, vector<16x128xf32>,
    } else {
    }
    %c0_i32_14 = arith.constant 0 : i32
    %18 = arith.cmpi eq, %arg1, %c0_i32_14 : i32
    %19 = arith.extui %18 : i1 to i32
    %c0_i32_15 = arith.constant 0 : i32
    %20 = arith.cmpi ne, %19, %c0_i32_15 : i32
    scf.if %20 {
      %c0_16 = arith.constant 0 : index
      %c0_17 = arith.constant 0 : index
      %21 = vector.load %arg6[%c0_16, %c0_17] : memref<1x128xf32, #tpu.memory_space<vmem>>, vector<1x128xf32>
      %22 = vector.broadcast %21 : vector<1x128xf32> to vector<16x128xf32>
      %23 = arith.addf %14, %22 : vector<16x128xf32>
      %c0_18 = arith.constant 0 : index
      %c0_19 = arith.constant 0 : index
      %24 = vector.load %arg7[%c0_18, %c0_19] : memref<16x128xf32, #tpu.memory_space<vmem>>, vector<16x128xf32>
      tpu.vector_store %arg7[%c0_18, %c0_19], %23 {strides = array<i32>} : memref<16x128xf32, #tpu.memory_space<vmem>>, vector<16x128xf32>,
    } else {
    }
    return
  }
  func.func @transform_0(%arg0: i32, %arg1: i32) -> (i32, i32) {
    %c0_i32 = arith.constant 0 : i32
    %c0_i32_0 = arith.constant 0 : i32
    return %arg0, %c0_i32 : i32, i32
  }
  func.func @transform_1(%arg0: i32, %arg1: i32) -> (i32, i32) {
    %c0_i32 = arith.constant 0 : i32
    %c0_i32_0 = arith.constant 0 : i32
    return %c0_i32, %arg1 : i32, i32
  }
  func.func @transform_2(%arg0: i32, %arg1: i32) -> (i32, i32) {
    %c0_i32 = arith.constant 0 : i32
    %c0_i32_0 = arith.constant 0 : i32
    return %c0_i32, %arg1 : i32, i32
  }
  func.func @transform_3(%arg0: i32, %arg1: i32) -> (i32, i32) {
    %c0_i32 = arith.constant 0 : i32
    %c0_i32_0 = arith.constant 0 : i32
    return %arg1, %c0_i32 : i32, i32
  }
  func.func @transform_4(%arg0: i32, %arg1: i32) -> (i32, i32) {
    %c0_i32 = arith.constant 0 : i32
    %c0_i32_0 = arith.constant 0 : i32
    %c0_i32_1 = arith.constant 0 : i32
    return %c0_i32, %c0_i32_0 : i32, i32
  }
  func.func @transform_5(%arg0: i32, %arg1: i32) -> (i32, i32) {
    %c0_i32 = arith.constant 0 : i32
    %c0_i32_0 = arith.constant 0 : i32
    return %arg0, %c0_i32 : i32, i32
  }
}

</mosaic_0001>

<bundles_post_ra>
// kernel: tpu_custom_call.1
= control target key start
LH: loop header
LB: loop body
LE: loop exit
PB: predicated region body
PF: predicated region fallthrough
CT: control target
= control target key end

     0   :  { %10 = vsyncpa [#allocation4], 0  ;;  %s1743_s0 = inlined_call_operand.hbm [shape: f32[16,128], index: 0, kind: input, shape index: {}]   ;;  %s1744_s1 = inlined_call_operand.hbm [shape: f32[128,1024], index: 1, kind: input, shape index: {}]   ;;  %s1745_s2 = inlined_call_operand.hbm [shape: f32[1,1024], index: 2, kind: input, shape index: {}]   ;;  %s1746_s3 = inlined_call_operand.hbm [shape: f32[1024,128], index: 3, kind: input, shape index: {}]   ;;  %s1747_s4 = inlined_call_operand.vmem [shape: f32[1,128], index: 4, kind: input, shape index: {}]   ;;  %s1748_s5 = inlined_call_operand.hbm [shape: f32[16,128], index: 5, kind: output, shape index: {}]  }
   0x1   :  { %11 = vsyncpa [#allocation7], 0 }
   0x2   :  { %12 = vsyncpa [#allocation10], 0 }
   0x3   :  { %13 = vsyncpa [#allocation5], 0  ;;  %s1584_s18 = smov [#allocation6]   ;;  %s1466_s22 = scalar_lea.hbm %s1744_s1, 16384 }
   0x4   :  { %s31_s19 = sshll.u32 %s1584_s18, 4  ;;  %p1467_p0 = scmp.ne.s32.totalorder %s1744_s1, %s1466_s22  ;;  %s32_s19 = int_to_ptr.vmem [resolvable:$true] %s31_s19 }
   0x5   :  { %p1470_p1 = scmp.lt.u32.totalorder %s1466_s22, %s1744_s1 }
   0x7   :  { %p1472_p2 = pnand %p1470_p1, %p1467_p0 }
   0x9   :  { %1475 = shalt.err (!%p1472_p2)
}
   0xa   :  { %s1476_s27 = scalar_lea.vmem %s32_s19, 16384  ;;  %p1481_p4 = scmp.lt.s32.totalorder %s32_s19, %s32_s19 }
   0xb   :  { %p1477_p3 = scmp.ne.s32.totalorder %s32_s19, %s1476_s27  ;;  %p1482_p5 = scmp.lt.s32.totalorder %s1476_s27, %s1476_s27 }
   0xd   :  { %p1483_p6 = por %p1482_p5, %p1481_p4 }
   0xf   :  { %p1484_p7 = pnand %p1483_p6, %p1477_p3 }
  0x11   :  { %1487 = shalt.err (!%p1484_p7)
}
  0x12   :  { %s1585_s28 = smov 1024   ;;  %s1586_s29 = smov 64  }
  0x13   :  { %37 = dma.hbm_to_vmem [thread:$0]  %s1744_s1, 16384, %s32_s19, [#allocation7], %s1585_s28, %s1585_s28, %s1586_s29  }
  0x14   :  { %s1587_s7 = smov [#allocation3]   ;;  %s1488_s11 = scalar_lea.hbm %s1743_s0, 256 }
  0x15   :  { %s19_s8 = sshll.u32 %s1587_s7, 4  ;;  %p1489_p8 = scmp.ne.s32.totalorder %s1743_s0, %s1488_s11  ;;  %s20_s8 = int_to_ptr.vmem [resolvable:$true] %s19_s8 }
  0x16   :  { %p1492_p9 = scmp.lt.u32.totalorder %s1488_s11, %s1743_s0 }
  0x18   :  { %p1494_p10 = pnand %p1492_p9, %p1489_p8 }
  0x1a   :  { %1497 = shalt.err (!%p1494_p10)
}
  0x1b   :  { %s1498_s16 = scalar_lea.vmem %s20_s8, 256  ;;  %p1503_p12 = scmp.lt.s32.totalorder %s20_s8, %s20_s8 }
  0x1c   :  { %p1499_p11 = scmp.ne.s32.totalorder %s20_s8, %s1498_s16  ;;  %p1504_p13 = scmp.lt.s32.totalorder %s1498_s16, %s1498_s16 }
  0x1e   :  { %p1505_p0 = por %p1504_p13, %p1503_p12 }
  0x20   :  { %p1506_p1 = pnand %p1505_p0, %p1499_p11 }
  0x22   :  { %1509 = shalt.err (!%p1506_p1)
}
  0x23   :  { %s1588_s1 = smov 128   ;;  %s1589_s17 = smov 8  }
  0x24   :  { %25 = dma.hbm_to_vmem [thread:$0]  %s1743_s0, 256, %s20_s8, [#allocation4], %s1588_s1, %s1588_s1, %s1589_s17  }
  0x25   :  { %s1590_s20 = smov [#allocation8]   ;;  %s1591_s22 = smov [#allocation9]  }
  0x26   :  { %s44_s21 = sshll.u32 %s1590_s20, 4  ;;  %s53_s23 = sshll.u32 %s1591_s22, 4  ;;  %s45_s21 = int_to_ptr.vmem [resolvable:$true] %s44_s21  ;;  %s1651_s23 = int_to_ptr.vmem [resolvable:$true] %s53_s23 }
  0x27   :  { %s1510_s26 = scalar_lea.hbm %s1745_s2, 128 }
  0x28   :  { %p1511_p2 = scmp.ne.s32.totalorder %s1745_s2, %s1510_s26  ;;  %p1514_p3 = scmp.lt.u32.totalorder %s1510_s26, %s1745_s2 }
  0x2a   :  { %p1516_p4 = pnand %p1514_p3, %p1511_p2 }
  0x2c   :  { %1519 = shalt.err (!%p1516_p4)
}
  0x2d   :  { %s1520_s0 = scalar_lea.vmem %s45_s21, 128  ;;  %p1525_p6 = scmp.lt.s32.totalorder %s45_s21, %s45_s21 }
  0x2e   :  { %p1521_p5 = scmp.ne.s32.totalorder %s45_s21, %s1520_s0  ;;  %p1526_p7 = scmp.lt.s32.totalorder %s1520_s0, %s1520_s0 }
  0x30   :  { %p1527_p8 = por %p1526_p7, %p1525_p6 }
  0x32   :  { %p1528_p9 = pnand %p1527_p8, %p1521_p5 }
  0x34   :  { %1531 = shalt.err (!%p1528_p9)
}
  0x35   :  { %47 = dma.hbm_to_vmem [thread:$0]  %s1745_s2, 128, %s45_s21, [#allocation7]  }
  0x36   :  { %s1532_s10 = scalar_lea.hbm %s1746_s3, 16384 }
  0x37   :  { %p1533_p10 = scmp.ne.s32.totalorder %s1746_s3, %s1532_s10  ;;  %p1536_p11 = scmp.lt.u32.totalorder %s1532_s10, %s1746_s3 }
  0x39   :  { %p1538_p12 = pnand %p1536_p11, %p1533_p10 }
  0x3b   :  { %1541 = shalt.err (!%p1538_p12)
}
  0x3c   :  { %s1542_s15 = scalar_lea.vmem %s1651_s23, 16384  ;;  %p1547_p0 = scmp.lt.s32.totalorder %s1651_s23, %s1651_s23 }
  0x3d   :  { %p1543_p13 = scmp.ne.s32.totalorder %s1651_s23, %s1542_s15  ;;  %p1548_p1 = scmp.lt.s32.totalorder %s1542_s15, %s1542_s15 }
  0x3f   :  { %p1549_p2 = por %p1548_p1, %p1547_p0 }
  0x41   :  { %p1550_p3 = pnand %p1549_p2, %p1543_p13 }
  0x43   :  { %1553 = shalt.err (!%p1550_p3)
}
  0x44   :  { %59 = dma.hbm_to_vmem [thread:$0]  %s1746_s3, 16384, %s1651_s23, [#allocation10], %s1588_s1, %s1588_s1, %s1589_s17  }
  0x45   :  { %1576 = dma.done.wait [#allocation4], 256  }
  0x46   :  { %1577 = vsyncadd [#allocation4], 4294967040 }
  0x47   :  { %1578 = dma.done.wait [#allocation7], 16512  }
  0x48   :  { %1579 = vsyncadd [#allocation7], 4294950784 }
  0x49   :  { %1580 = dma.done.wait [#allocation10], 16384  }
  0x4a   :  { %1581 = vsyncadd [#allocation10], 4294950912  ;;  %v1592_v0 = vmov 0.0   ;;  %v83_v1 = vld [vmem:[#allocation6 + $0x8] sm:$0xff]  ;;  %v85_v3 = vld [vmem:[#allocation6 + $0x18] sm:$0xff]  ;;  %s1593_s19 = smov [#allocation11]  }
  0x4b   :  { %316 = vmatprep.mubr.f32.mxu0 %v1592_v0  ;;  %393 = vmatprep.mubr.f32.mxu1 %v1592_v0  ;;  %v91_v2 = vld [vmem:[#allocation6 + $0x48] sm:$0xff]  ;;  %v93_v5 = vld [vmem:[#allocation6 + $0x58] sm:$0xff]  ;;  %v82_v6 = vld [vmem:[#allocation6] sm:$0xff]  ;;  %s1033_s20 = sshll.u32 %s1593_s19, 4  ;;  %s1034_s20 = int_to_ptr.vmem [resolvable:$true] %s1033_s20 }
  0x4c   :  { %v1200_v4 = vpack.c.bf16 %v91_v2, %v83_v1  ;;  %v90_v7 = vld [vmem:[#allocation6 + $0x40] sm:$0xff]  ;;  %v1232_v8 = vpack.c.bf16 %v93_v5, %v85_v3  ;;  %v84_v10 = vld [vmem:[#allocation6 + $0x10] sm:$0xff]  ;;  %v99_v12 = vld [vmem:[#allocation6 + $0x88] sm:$0xff]  ;;  %s1554_s21 = scalar_lea.vmem %s1034_s20, 256  ;;  %p1559_p5 = scmp.lt.s32.totalorder %s1034_s20, %s1034_s20 }
  0x4d   :  { %v1202_v9 = vpack.c.bf16 %v90_v7, %v82_v6  ;;  %v92_v11 = vld [vmem:[#allocation6 + $0x50] sm:$0xff]  ;;  %v107_v14 = vld [vmem:[#allocation6 + $0xc8] sm:$0xff]  ;;  %v101_v15 = vld [vmem:[#allocation6 + $0x98] sm:$0xff]  ;;  %p1555_p4 = scmp.ne.s32.totalorder %s1034_s20, %s1554_s21  ;;  %p1560_p6 = scmp.lt.s32.totalorder %s1554_s21, %s1554_s21 }
  0x4e   :  { %1201 = vmatprep.subr.bf16.mxu0 %v1200_v4  ;;  %v1234_v13 = vpack.c.bf16 %v92_v11, %v84_v10  ;;  %v109_v16 = vld [vmem:[#allocation6 + $0xd8] sm:$0xff]  ;;  %1233 = vmatprep.subr.bf16.mxu1 %v1232_v8  ;;  %v1204_v17 = vpack.c.bf16 %v107_v14, %v99_v12  ;;  %v98_v19 = vld [vmem:[#allocation6 + $0x80] sm:$0xff]  ;;  %v100_v21 = vld [vmem:[#allocation6 + $0x90] sm:$0xff] }
  0x4f   :  { %1203 = vmatpush1.bf16.msra.mxu0 %v1202_v9  ;;  %v1236_v18 = vpack.c.bf16 %v109_v16, %v101_v15  ;;  %v106_v20 = vld [vmem:[#allocation6 + $0xc0] sm:$0xff]  ;;  %v108_v23 = vld [vmem:[#allocation6 + $0xd0] sm:$0xff]  ;;  %v115_v24 = vld [vmem:[#allocation6 + $0x108] sm:$0xff]  ;;  %p1561_p7 = por %p1560_p6, %p1559_p5 }
  0x50   :  { %1235 = vmatpush1.bf16.msra.mxu1 %v1234_v13  ;;  %v1206_v22 = vpack.c.bf16 %v106_v20, %v98_v19  ;;  %v123_v25 = vld [vmem:[#allocation6 + $0x148] sm:$0xff]  ;;  %1205 = vmatprep.subr.bf16.mxu0 %v1204_v17  ;;  %v1238_v26 = vpack.c.bf16 %v108_v23, %v100_v21  ;;  %v117_v28 = vld [vmem:[#allocation6 + $0x118] sm:$0xff]  ;;  %v114_v30 = vld [vmem:[#allocation6 + $0x100] sm:$0xff] }
  0x51   :  { %1237 = vmatprep.subr.bf16.mxu1 %v1236_v18  ;;  %v1208_v27 = vpack.c.bf16 %v123_v25, %v115_v24  ;;  %v125_v29 = vld [vmem:[#allocation6 + $0x158] sm:$0xff]  ;;  %v122_v32 = vld [vmem:[#allocation6 + $0x140] sm:$0xff]  ;;  %v116_v33 = vld [vmem:[#allocation6 + $0x110] sm:$0xff]  ;;  %p1562_p8 = pnand %p1561_p7, %p1555_p4 }
  0x52   :  { %v1240_v31 = vpack.c.bf16 %v125_v29, %v117_v28  ;;  %v124_v34 = vld [vmem:[#allocation6 + $0x150] sm:$0xff]  ;;  %v1210_v35 = vpack.c.bf16 %v122_v32, %v114_v30  ;;  %v131_v36 = vld [vmem:[#allocation6 + $0x188] sm:$0xff]  ;;  %v133_v38 = vld [vmem:[#allocation6 + $0x198] sm:$0xff] }
  0x53   :  { %1207 = vmatpush1.bf16.msra.mxu0 %v1206_v22  ;;  %v139_v37 = vld [vmem:[#allocation6 + $0x1c8] sm:$0xff]  ;;  %v1242_v39 = vpack.c.bf16 %v124_v34, %v116_v33  ;;  %v141_v41 = vld [vmem:[#allocation6 + $0x1d8] sm:$0xff]  ;;  %v130_v42 = vld [vmem:[#allocation6 + $0x180] sm:$0xff] }
  0x54   :  { %1239 = vmatpush1.bf16.msra.mxu1 %v1238_v26  ;;  %1209 = vmatprep.subr.bf16.mxu0 %v1208_v27  ;;  %v1212_v40 = vpack.c.bf16 %v139_v37, %v131_v36  ;;  %v138_v43 = vld [vmem:[#allocation6 + $0x1c0] sm:$0xff]  ;;  %v1244_v44 = vpack.c.bf16 %v141_v41, %v133_v38  ;;  %v132_v45 = vld [vmem:[#allocation6 + $0x190] sm:$0xff]  ;;  %v147_v47 = vld [vmem:[#allocation6 + $0x208] sm:$0xff] }
  0x55   :  { %1241 = vmatprep.subr.bf16.mxu1 %v1240_v31  ;;  %v140_v46 = vld [vmem:[#allocation6 + $0x1d0] sm:$0xff]  ;;  %v155_v48 = vld [vmem:[#allocation6 + $0x248] sm:$0xff]  ;;  %v149_v49 = vld [vmem:[#allocation6 + $0x218] sm:$0xff]  ;;  %v1214_v51 = vpack.c.bf16 %v138_v43, %v130_v42 }
  0x56   :  { %v157_v50 = vld [vmem:[#allocation6 + $0x258] sm:$0xff]  ;;  %v1246_v52 = vpack.c.bf16 %v140_v46, %v132_v45  ;;  %v1216_v53 = vpack.c.bf16 %v155_v48, %v147_v47  ;;  %v146_v54 = vld [vmem:[#allocation6 + $0x200] sm:$0xff]  ;;  %v148_v56 = vld [vmem:[#allocation6 + $0x210] sm:$0xff] }
  0x57   :  { %1211 = vmatpush1.bf16.msra.mxu0 %v1210_v35  ;;  %v154_v55 = vld [vmem:[#allocation6 + $0x240] sm:$0xff]  ;;  %v1248_v57 = vpack.c.bf16 %v157_v50, %v149_v49  ;;  %v156_v58 = vld [vmem:[#allocation6 + $0x250] sm:$0xff]  ;;  %v163_v59 = vld [vmem:[#allocation6 + $0x288] sm:$0xff] }
  0x58   :  { %1243 = vmatpush1.bf16.msra.mxu1 %v1242_v39  ;;  %1213 = vmatprep.subr.bf16.mxu0 %v1212_v40  ;;  %v171_v60 = vld [vmem:[#allocation6 + $0x2c8] sm:$0xff]  ;;  %v165_v61 = vld [vmem:[#allocation6 + $0x298] sm:$0xff]  ;;  %v1218_v63 = vpack.c.bf16 %v154_v55, %v146_v54  ;;  %v1250_v1 = vpack.c.bf16 %v156_v58, %v148_v56  ;;  %v162_v3 = vld [vmem:[#allocation6 + $0x280] sm:$0xff] }
  0x59   :  { %1245 = vmatprep.subr.bf16.mxu1 %v1244_v44  ;;  %v173_v62 = vld [vmem:[#allocation6 + $0x2d8] sm:$0xff]  ;;  %v1220_v2 = vpack.c.bf16 %v171_v60, %v163_v59  ;;  %v170_v4 = vld [vmem:[#allocation6 + $0x2c0] sm:$0xff]  ;;  %v164_v5 = vld [vmem:[#allocation6 + $0x290] sm:$0xff] }
  0x5a   :  { %v1252_v6 = vpack.c.bf16 %v173_v62, %v165_v61  ;;  %v172_v7 = vld [vmem:[#allocation6 + $0x2d0] sm:$0xff]  ;;  %v179_v8 = vld [vmem:[#allocation6 + $0x308] sm:$0xff]  ;;  %v181_v10 = vld [vmem:[#allocation6 + $0x318] sm:$0xff]  ;;  %v1222_v12 = vpack.c.bf16 %v170_v4, %v162_v3 }
  0x5b   :  { %1215 = vmatpush1.bf16.msra.mxu0 %v1214_v51  ;;  %v187_v9 = vld [vmem:[#allocation6 + $0x348] sm:$0xff]  ;;  %v189_v11 = vld [vmem:[#allocation6 + $0x358] sm:$0xff]  ;;  %v1254_v13 = vpack.c.bf16 %v172_v7, %v164_v5  ;;  %v178_v15 = vld [vmem:[#allocation6 + $0x300] sm:$0xff] }
  0x5c   :  { %1247 = vmatpush1.bf16.msra.mxu1 %v1246_v52  ;;  %1217 = vmatprep.subr.bf16.mxu0 %v1216_v53  ;;  %v1224_v14 = vpack.c.bf16 %v187_v9, %v179_v8  ;;  %v186_v16 = vld [vmem:[#allocation6 + $0x340] sm:$0xff]  ;;  %v180_v17 = vld [vmem:[#allocation6 + $0x310] sm:$0xff]  ;;  %v1256_v18 = vpack.c.bf16 %v189_v11, %v181_v10  ;;  %v195_v20 = vld [vmem:[#allocation6 + $0x388] sm:$0xff] }
  0x5d   :  { %1249 = vmatprep.subr.bf16.mxu1 %v1248_v57  ;;  %v188_v19 = vld [vmem:[#allocation6 + $0x350] sm:$0xff]  ;;  %v203_v21 = vld [vmem:[#allocation6 + $0x3c8] sm:$0xff]  ;;  %v197_v22 = vld [vmem:[#allocation6 + $0x398] sm:$0xff]  ;;  %v1226_v24 = vpack.c.bf16 %v186_v16, %v178_v15 }
  0x5e   :  { %v205_v23 = vld [vmem:[#allocation6 + $0x3d8] sm:$0xff]  ;;  %v1258_v25 = vpack.c.bf16 %v188_v19, %v180_v17  ;;  %v1228_v26 = vpack.c.bf16 %v203_v21, %v195_v20  ;;  %v194_v27 = vld [vmem:[#allocation6 + $0x380] sm:$0xff]  ;;  %v196_v29 = vld [vmem:[#allocation6 + $0x390] sm:$0xff] }
  0x5f   :  { %1219 = vmatpush1.bf16.msra.mxu0 %v1218_v63  ;;  %v202_v28 = vld [vmem:[#allocation6 + $0x3c0] sm:$0xff]  ;;  %v1260_v30 = vpack.c.bf16 %v205_v23, %v197_v22  ;;  %v204_v31 = vld [vmem:[#allocation6 + $0x3d0] sm:$0xff]  ;;  %v87_v32 = vld [vmem:[#allocation6 + $0x28] sm:$0xff] }
  0x60   :  { %1251 = vmatpush1.bf16.msra.mxu1 %v1250_v1  ;;  %1221 = vmatprep.subr.bf16.mxu0 %v1220_v2  ;;  %v95_v33 = vld [vmem:[#allocation6 + $0x68] sm:$0xff]  ;;  %v89_v34 = vld [vmem:[#allocation6 + $0x38] sm:$0xff]  ;;  %v1230_v36 = vpack.c.bf16 %v202_v28, %v194_v27  ;;  %v1262_v37 = vpack.c.bf16 %v204_v31, %v196_v29  ;;  %v86_v39 = vld [vmem:[#allocation6 + $0x20] sm:$0xff] }
  0x61   :  { %1253 = vmatprep.subr.bf16.mxu1 %v1252_v6  ;;  %v97_v35 = vld [vmem:[#allocation6 + $0x78] sm:$0xff]  ;;  %v1264_v38 = vpack.c.bf16 %v95_v33, %v87_v32  ;;  %v94_v40 = vld [vmem:[#allocation6 + $0x60] sm:$0xff]  ;;  %v88_v41 = vld [vmem:[#allocation6 + $0x30] sm:$0xff] }
  0x62   :  { %v1296_v42 = vpack.c.bf16 %v97_v35, %v89_v34  ;;  %v96_v43 = vld [vmem:[#allocation6 + $0x70] sm:$0xff]  ;;  %v103_v44 = vld [vmem:[#allocation6 + $0xa8] sm:$0xff]  ;;  %v105_v46 = vld [vmem:[#allocation6 + $0xb8] sm:$0xff]  ;;  %v1266_v49 = vpack.c.bf16 %v94_v40, %v86_v39 }
  0x63   :  { %1223 = vmatpush1.bf16.msra.mxu0 %v1222_v12  ;;  %v111_v45 = vld [vmem:[#allocation6 + $0xe8] sm:$0xff]  ;;  %v113_v47 = vld [vmem:[#allocation6 + $0xf8] sm:$0xff]  ;;  %v1687_v48 = vld [vmem:[#allocation3] sm:$0xff]  ;;  %v1298_v50 = vpack.c.bf16 %v96_v43, %v88_v41 }
  0x64   :  { %1255 = vmatpush1.bf16.msra.mxu1 %v1254_v13  ;;  %1225 = vmatprep.subr.bf16.mxu0 %v1224_v14  ;;  %v1268_v51 = vpack.c.bf16 %v111_v45, %v103_v44  ;;  %v102_v52 = vld [vmem:[#allocation6 + $0xa0] sm:$0xff]  ;;  %v104_v54 = vld [vmem:[#allocation6 + $0xb0] sm:$0xff]  ;;  %v1300_v55 = vpack.c.bf16 %v113_v47, %v105_v46  ;;  %v119_v57 = vld [vmem:[#allocation6 + $0x128] sm:$0xff] }
  0x65   :  { %1257 = vmatprep.subr.bf16.mxu1 %v1256_v18  ;;  %v110_v53 = vld [vmem:[#allocation6 + $0xe0] sm:$0xff]  ;;  %v112_v56 = vld [vmem:[#allocation6 + $0xf0] sm:$0xff]  ;;  %v127_v58 = vld [vmem:[#allocation6 + $0x168] sm:$0xff] }
  0x66   :  { %v121_v59 = vld [vmem:[#allocation6 + $0x138] sm:$0xff]  ;;  %v1270_v61 = vpack.c.bf16 %v110_v53, %v102_v52  ;;  %v1302_v62 = vpack.c.bf16 %v112_v56, %v104_v54  ;;  %v1272_v63 = vpack.c.bf16 %v127_v58, %v119_v57  ;;  %v118_v1 = vld [vmem:[#allocation6 + $0x120] sm:$0xff]  ;;  %v120_v3 = vld [vmem:[#allocation6 + $0x130] sm:$0xff] }
  0x67   :  { %1227 = vmatpush1.bf16.msra.mxu0 %v1226_v24  ;;  %v129_v60 = vld [vmem:[#allocation6 + $0x178] sm:$0xff]  ;;  %v126_v2 = vld [vmem:[#allocation6 + $0x160] sm:$0xff]  ;;  %v128_v5 = vld [vmem:[#allocation6 + $0x170] sm:$0xff] }
  0x68   :  { %1259 = vmatpush1.bf16.msra.mxu1 %v1258_v25  ;;  %1229 = vmatprep.subr.bf16.mxu0 %v1228_v26  ;;  %v1304_v4 = vpack.c.bf16 %v129_v60, %v121_v59  ;;  %v135_v6 = vld [vmem:[#allocation6 + $0x1a8] sm:$0xff]  ;;  %v137_v8 = vld [vmem:[#allocation6 + $0x1b8] sm:$0xff]  ;;  %v1274_v11 = vpack.c.bf16 %v126_v2, %v118_v1  ;;  %v1306_v12 = vpack.c.bf16 %v128_v5, %v120_v3  ;;  %v134_v14 = vld [vmem:[#allocation6 + $0x1a0] sm:$0xff] }
  0x69   :  { %1261 = vmatprep.subr.bf16.mxu1 %v1260_v30  ;;  %v143_v7 = vld [vmem:[#allocation6 + $0x1e8] sm:$0xff]  ;;  %v145_v9 = vld [vmem:[#allocation6 + $0x1f8] sm:$0xff]  ;;  %v142_v15 = vld [vmem:[#allocation6 + $0x1e0] sm:$0xff] }
  0x6a   :  { %v1693_v10 = vld [vmem:[#allocation3 + $0x8] sm:$0xff]  ;;  %v1276_v13 = vpack.c.bf16 %v143_v7, %v135_v6  ;;  %v136_v16 = vld [vmem:[#allocation6 + $0x1b0] sm:$0xff]  ;;  %v1308_v17 = vpack.c.bf16 %v145_v9, %v137_v8  ;;  %v151_v19 = vld [vmem:[#allocation6 + $0x228] sm:$0xff]  ;;  %v1278_v23 = vpack.c.bf16 %v142_v15, %v134_v14 }
  0x6b   :  { %1231 = vmatpush1.bf16.msra.mxu0 %v1230_v36  ;;  %v144_v18 = vld [vmem:[#allocation6 + $0x1f0] sm:$0xff]  ;;  %v159_v20 = vld [vmem:[#allocation6 + $0x268] sm:$0xff]  ;;  %v153_v21 = vld [vmem:[#allocation6 + $0x238] sm:$0xff] }
  0x6c   :  { %1263 = vmatpush1.bf16.msra.mxu1 %v1262_v37  ;;  %1265 = vmatprep.subr.bf16.mxu0 %v1264_v38  ;;  %v161_v22 = vld [vmem:[#allocation6 + $0x278] sm:$0xff]  ;;  %v1310_v24 = vpack.c.bf16 %v144_v18, %v136_v16  ;;  %v1280_v25 = vpack.c.bf16 %v159_v20, %v151_v19  ;;  %v150_v26 = vld [vmem:[#allocation6 + $0x220] sm:$0xff]  ;;  %v152_v28 = vld [vmem:[#allocation6 + $0x230] sm:$0xff] }
  0x6d   :  { %1297 = vmatprep.subr.bf16.mxu1 %v1296_v42  ;;  %v158_v27 = vld [vmem:[#allocation6 + $0x260] sm:$0xff]  ;;  %v1312_v29 = vpack.c.bf16 %v161_v22, %v153_v21  ;;  %v160_v30 = vld [vmem:[#allocation6 + $0x270] sm:$0xff]  ;;  %v167_v31 = vld [vmem:[#allocation6 + $0x2a8] sm:$0xff] }
  0x6e   :  { %317 = vmatmul.mubr.f32.vlgmr.msra.gmra.mrb[0].mxu0 %v1687_v48  ;;  %v175_v32 = vld [vmem:[#allocation6 + $0x2e8] sm:$0xff]  ;;  %v169_v33 = vld [vmem:[#allocation6 + $0x2b8] sm:$0xff]  ;;  %v1282_v35 = vpack.c.bf16 %v158_v27, %v150_v26  ;;  %v1314_v36 = vpack.c.bf16 %v160_v30, %v152_v28  ;;  %v166_v38 = vld [vmem:[#allocation6 + $0x2a0] sm:$0xff] }
  0x6f   :  { %394 = vmatmul.mubr.f32.vlgmr.msra.gmra.mrb[0].mxu1 %v1687_v48  ;;  %1267 = vmatpush1.bf16.msra.mxu0 %v1266_v49  ;;  %v177_v34 = vld [vmem:[#allocation6 + $0x2f8] sm:$0xff]  ;;  %v1284_v37 = vpack.c.bf16 %v175_v32, %v167_v31  ;;  %v174_v39 = vld [vmem:[#allocation6 + $0x2e0] sm:$0xff]  ;;  %v168_v40 = vld [vmem:[#allocation6 + $0x2b0] sm:$0xff] }
  0x70   :  { %1299 = vmatpush1.bf16.msra.mxu1 %v1298_v50  ;;  %1269 = vmatprep.subr.bf16.mxu0 %v1268_v51  ;;  %v1316_v41 = vpack.c.bf16 %v177_v34, %v169_v33  ;;  %v176_v42 = vld [vmem:[#allocation6 + $0x2f0] sm:$0xff]  ;;  %v183_v43 = vld [vmem:[#allocation6 + $0x328] sm:$0xff]  ;;  %v185_v45 = vld [vmem:[#allocation6 + $0x338] sm:$0xff]  ;;  %v1286_v47 = vpack.c.bf16 %v174_v39, %v166_v38 }
  0x71   :  { %1301 = vmatprep.subr.bf16.mxu1 %v1300_v55  ;;  %322 = vmatprep.mubr.f32.mxu0 %v1592_v0  ;;  %v191_v44 = vld [vmem:[#allocation6 + $0x368] sm:$0xff]  ;;  %v193_v46 = vld [vmem:[#allocation6 + $0x378] sm:$0xff]  ;;  %v1318_v49 = vpack.c.bf16 %v176_v42, %v168_v40  ;;  %v182_v51 = vld [vmem:[#allocation6 + $0x320] sm:$0xff] }
  0x72   :  { %399 = vmatprep.mubr.f32.mxu1 %v1592_v0  ;;  %323 = vmatmul.mubr.f32.gmra.mrb[2].mxu0 %v1693_v10  ;;  %v1288_v50 = vpack.c.bf16 %v191_v44, %v183_v43  ;;  %v190_v52 = vld [vmem:[#allocation6 + $0x360] sm:$0xff]  ;;  %v184_v53 = vld [vmem:[#allocation6 + $0x330] sm:$0xff]  ;;  %v1320_v54 = vpack.c.bf16 %v193_v46, %v185_v45  ;;  %v199_v56 = vld [vmem:[#allocation6 + $0x3a8] sm:$0xff] }
  0x73   :  { %1271 = vmatpush1.bf16.msra.mxu0 %v1270_v61  ;;  %400 = vmatmul.mubr.f32.gmra.mrb[2].mxu1 %v1693_v10  ;;  %v192_v55 = vld [vmem:[#allocation6 + $0x370] sm:$0xff]  ;;  %v207_v57 = vld [vmem:[#allocation6 + $0x3e8] sm:$0xff]  ;;  %v201_v58 = vld [vmem:[#allocation6 + $0x3b8] sm:$0xff]  ;;  %v1290_v60 = vpack.c.bf16 %v190_v52, %v182_v51 }
  0x74   :  { %1303 = vmatpush1.bf16.msra.mxu1 %v1302_v62  ;;  %1273 = vmatprep.subr.bf16.mxu0 %v1272_v63  ;;  %v209_v59 = vld [vmem:[#allocation6 + $0x3f8] sm:$0xff]  ;;  %v1322_v61 = vpack.c.bf16 %v192_v55, %v184_v53  ;;  %v1292_v62 = vpack.c.bf16 %v207_v57, %v199_v56  ;;  %v198_v63 = vld [vmem:[#allocation6 + $0x3a0] sm:$0xff]  ;;  %v200_v2 = vld [vmem:[#allocation6 + $0x3b0] sm:$0xff] }
  0x75   :  { %1305 = vmatprep.subr.bf16.mxu1 %v1304_v4  ;;  %470 = vmatprep.mubr.f32.mxu0 %v1592_v0  ;;  %v206_v1 = vld [vmem:[#allocation6 + $0x3e0] sm:$0xff]  ;;  %v1324_v3 = vpack.c.bf16 %v209_v59, %v201_v58  ;;  %v208_v4 = vld [vmem:[#allocation6 + $0x3f0] sm:$0xff]  ;;  %v592_v5 = vld [vmem:[#allocation9 + $0x80] sm:$0xff] }
  0x76   :  { %547 = vmatprep.mubr.f32.mxu1 %v1592_v0  ;;  %v593_v6 = vld [vmem:[#allocation9 + $0x88] sm:$0xff]  ;;  %v624_v7 = vld [vmem:[#allocation9 + $0x180] sm:$0xff]  ;;  %v1294_v9 = vpack.c.bf16 %v206_v1, %v198_v63  ;;  %v594_v18 = vld [vmem:[#allocation9 + $0x90] sm:$0xff] }
  0x77   :  { %1275 = vmatpush1.bf16.msra.mxu0 %v1274_v11  ;;  %v625_v8 = vld [vmem:[#allocation9 + $0x188] sm:$0xff]  ;;  %v1326_v11 = vpack.c.bf16 %v208_v4, %v200_v2  ;;  %v576_v14 = vld [vmem:[#allocation9] sm:$0xff]  ;;  %v595_v19 = vld [vmem:[#allocation9 + $0x98] sm:$0xff] }
  0x78   :  { %1307 = vmatpush1.bf16.msra.mxu1 %v1306_v12  ;;  %1277 = vmatprep.subr.bf16.mxu0 %v1276_v13  ;;  %v1328_v12 = vpack.c.bf16 %v593_v6, %v592_v5  ;;  %v1360_v13 = vpack.c.bf16 %v625_v8, %v624_v7  ;;  %v577_v15 = vld [vmem:[#allocation9 + $0x8] sm:$0xff]  ;;  %v608_v16 = vld [vmem:[#allocation9 + $0x100] sm:$0xff]  ;;  %v626_v20 = vld [vmem:[#allocation9 + $0x190] sm:$0xff] }
  0x79   :  { %1309 = vmatprep.subr.bf16.mxu1 %v1308_v17  ;;  %v609_v17 = vld [vmem:[#allocation9 + $0x108] sm:$0xff]  ;;  %v627_v21 = vld [vmem:[#allocation9 + $0x198] sm:$0xff]  ;;  %v1330_v22 = vpack.c.bf16 %v577_v15, %v576_v14  ;;  %v610_v27 = vld [vmem:[#allocation9 + $0x110] sm:$0xff] }
  0x7a   :  { %v579_v26 = vld [vmem:[#allocation9 + $0x18] sm:$0xff]  ;;  %v1364_v28 = vpack.c.bf16 %v627_v21, %v626_v20  ;;  %v596_v30 = vld [vmem:[#allocation9 + $0xa0] sm:$0xff]  ;;  %v597_v31 = vld [vmem:[#allocation9 + $0xa8] sm:$0xff] }
  0x7b   :  { %1279 = vmatpush1.bf16.msra.mxu0 %v1278_v23  ;;  %v1362_v23 = vpack.c.bf16 %v609_v17, %v608_v16  ;;  %v628_v32 = vld [vmem:[#allocation9 + $0x1a0] sm:$0xff]  ;;  %v629_v33 = vld [vmem:[#allocation9 + $0x1a8] sm:$0xff]  ;;  %v599_v42 = vld [vmem:[#allocation9 + $0xb8] sm:$0xff] }
  0x7c   :  { %1311 = vmatpush1.bf16.msra.mxu1 %v1310_v24  ;;  %1281 = vmatprep.subr.bf16.mxu0 %v1280_v25  ;;  %v1332_v24 = vpack.c.bf16 %v595_v19, %v594_v18  ;;  %v578_v25 = vld [vmem:[#allocation9 + $0x10] sm:$0xff]  ;;  %v581_v38 = vld [vmem:[#allocation9 + $0x28] sm:$0xff]  ;;  %v612_v39 = vld [vmem:[#allocation9 + $0x120] sm:$0xff]  ;;  %v1368_v40 = vpack.c.bf16 %v629_v33, %v628_v32 }
  0x7d   :  { %1313 = vmatprep.subr.bf16.mxu1 %v1312_v29  ;;  %v611_v29 = vld [vmem:[#allocation9 + $0x118] sm:$0xff]  ;;  %v1334_v34 = vpack.c.bf16 %v579_v26, %v578_v25  ;;  %v630_v43 = vld [vmem:[#allocation9 + $0x1b0] sm:$0xff]  ;;  %v600_v53 = vld [vmem:[#allocation9 + $0xc0] sm:$0xff] }
  0x7e   :  { %v615_v52 = vld [vmem:[#allocation9 + $0x138] sm:$0xff]  ;;  %v632_v55 = vld [vmem:[#allocation9 + $0x1c0] sm:$0xff]  ;;  %v633_v56 = vld [vmem:[#allocation9 + $0x1c8] sm:$0xff] }
  0x7f   :  { %1283 = vmatpush1.bf16.msra.mxu0 %v1282_v35  ;;  %v1366_v35 = vpack.c.bf16 %v611_v29, %v610_v27  ;;  %v584_v59 = vld [vmem:[#allocation9 + $0x40] sm:$0xff]  ;;  %v617_v63 = vld [vmem:[#allocation9 + $0x148] sm:$0xff]  ;;  %v602_v1 = vld [vmem:[#allocation9 + $0xd0] sm:$0xff] }
  0x80   :  { %1315 = vmatpush1.bf16.msra.mxu1 %v1314_v36  ;;  %1285 = vmatprep.subr.bf16.mxu0 %v1284_v37  ;;  %v1336_v36 = vpack.c.bf16 %v597_v31, %v596_v30  ;;  %v580_v37 = vld [vmem:[#allocation9 + $0x20] sm:$0xff]  ;;  %v603_v2 = vld [vmem:[#allocation9 + $0xd8] sm:$0xff]  ;;  %v586_v8 = vld [vmem:[#allocation9 + $0x50] sm:$0xff] }
  0x81   :  { %1317 = vmatprep.subr.bf16.mxu1 %v1316_v41  ;;  %v598_v41 = vld [vmem:[#allocation9 + $0xb0] sm:$0xff]  ;;  %v1338_v44 = vpack.c.bf16 %v581_v38, %v580_v37  ;;  %v635_v4 = vld [vmem:[#allocation9 + $0x1d8] sm:$0xff]  ;;  %v1348_v7 = vpack.c.bf16 %v603_v2, %v602_v1  ;;  %v604_v14 = vld [vmem:[#allocation9 + $0xe0] sm:$0xff] }
  0x82   :  { %v1340_v46 = vpack.c.bf16 %v599_v42, %v598_v41  ;;  %v605_v15 = vld [vmem:[#allocation9 + $0xe8] sm:$0xff]  ;;  %v636_v16 = vld [vmem:[#allocation9 + $0x1e0] sm:$0xff]  ;;  %v607_v29 = vld [vmem:[#allocation9 + $0xf8] sm:$0xff] }
  0x83   :  { %1287 = vmatpush1.bf16.msra.mxu0 %v1286_v47  ;;  %v582_v47 = vld [vmem:[#allocation9 + $0x30] sm:$0xff]  ;;  %v637_v17 = vld [vmem:[#allocation9 + $0x1e8] sm:$0xff]  ;;  %v1352_v20 = vpack.c.bf16 %v605_v15, %v604_v14  ;;  %v639_v32 = vld [vmem:[#allocation9 + $0x1f8] sm:$0xff] }
  0x84   :  { %1319 = vmatpush1.bf16.msra.mxu1 %v1318_v49  ;;  %1289 = vmatprep.subr.bf16.mxu0 %v1288_v50  ;;  %v583_v49 = vld [vmem:[#allocation9 + $0x38] sm:$0xff]  ;;  %v614_v50 = vld [vmem:[#allocation9 + $0x130] sm:$0xff]  ;;  %v1384_v21 = vpack.c.bf16 %v637_v17, %v636_v16  ;;  %v621_v26 = vld [vmem:[#allocation9 + $0x168] sm:$0xff] }
  0x85   :  { %1321 = vmatprep.subr.bf16.mxu1 %v1320_v54  ;;  %v601_v54 = vld [vmem:[#allocation9 + $0xc8] sm:$0xff]  ;;  %v1374_v57 = vpack.c.bf16 %v615_v52, %v614_v50  ;;  %v638_v30 = vld [vmem:[#allocation9 + $0x1f0] sm:$0xff]  ;;  %v623_v38 = vld [vmem:[#allocation9 + $0x178] sm:$0xff] }
  0x86   :  { %v1344_v58 = vpack.c.bf16 %v601_v54, %v600_v53  ;;  %v590_v33 = vld [vmem:[#allocation9 + $0x70] sm:$0xff]  ;;  %v688_v41 = vld [vmem:[#allocation9 + $0x380] sm:$0xff]  ;;  %v673_v2 = vld [vmem:[#allocation9 + $0x308] sm:$0xff] }
  0x87   :  { %1291 = vmatpush1.bf16.msra.mxu0 %v1290_v60  ;;  %v585_v60 = vld [vmem:[#allocation9 + $0x48] sm:$0xff]  ;;  %v622_v37 = vld [vmem:[#allocation9 + $0x170] sm:$0xff]  ;;  %v643_v17 = vld [vmem:[#allocation9 + $0x218] sm:$0xff] }
  0x88   :  { %1323 = vmatpush1.bf16.msra.mxu1 %v1322_v61  ;;  %1293 = vmatprep.subr.bf16.mxu0 %v1292_v62  ;;  %v616_v61 = vld [vmem:[#allocation9 + $0x140] sm:$0xff]  ;;  %v1376_v62 = vpack.c.bf16 %v633_v56, %v632_v55  ;;  %v1346_v5 = vpack.c.bf16 %v585_v60, %v584_v59  ;;  %v641_v60 = vld [vmem:[#allocation9 + $0x208] sm:$0xff]  ;;  %v642_v16 = vld [vmem:[#allocation9 + $0x210] sm:$0xff] }
  0x89   :  { %1325 = vmatprep.subr.bf16.mxu1 %v1324_v3  ;;  %v634_v3 = vld [vmem:[#allocation9 + $0x1d0] sm:$0xff]  ;;  %v1378_v6 = vpack.c.bf16 %v617_v63, %v616_v61  ;;  %v640_v59 = vld [vmem:[#allocation9 + $0x200] sm:$0xff] }
  0x8a   :  { %v672_v61 = vld [vmem:[#allocation9 + $0x300] sm:$0xff] }
  0x8b   :  { %1295 = vmatpush1.bf16.msra.mxu0 %v1294_v9  ;;  %v587_v9 = vld [vmem:[#allocation9 + $0x58] sm:$0xff]  ;;  %v1426_v14 = vpack.c.bf16 %v673_v2, %v672_v61  ;;  %v649_v2 = vld [vmem:[#allocation9 + $0x248] sm:$0xff] }
  0x8c   :  { %1327 = vmatpush1.bf16.msra.mxu1 %v1326_v11  ;;  %1329 = vmatprep.subr.bf16.mxu0 %v1328_v12  ;;  %v618_v11 = vld [vmem:[#allocation9 + $0x150] sm:$0xff]  ;;  %v1380_v12 = vpack.c.bf16 %v635_v4, %v634_v3  ;;  %v1350_v18 = vpack.c.bf16 %v587_v9, %v586_v8  ;;  %v659_v4 = vld [vmem:[#allocation9 + $0x298] sm:$0xff] }
  0x8d   :  { %1361 = vmatprep.subr.bf16.mxu1 %v1360_v13  ;;  %v619_v13 = vld [vmem:[#allocation9 + $0x158] sm:$0xff]  ;;  %v658_v3 = vld [vmem:[#allocation9 + $0x290] sm:$0xff] }
  0x8e   :  { %471 = vmatmul.mubr.f32.vlgmr.msra.gmra.mrb[4].mxu0 %v1687_v48  ;;  %v1382_v19 = vpack.c.bf16 %v619_v13, %v618_v11  ;;  %v691_v8 = vld [vmem:[#allocation9 + $0x398] sm:$0xff]  ;;  %v1396_v15 = vpack.c.bf16 %v659_v4, %v658_v3  ;;  %v680_v3 = vld [vmem:[#allocation9 + $0x340] sm:$0xff] }
  0x8f   :  { %548 = vmatmul.mubr.f32.vlgmr.msra.gmra.mrb[4].mxu1 %v1687_v48  ;;  %476 = vmatprep.mubr.f32.mxu0 %v1592_v0  ;;  %v613_v48 = vld [vmem:[#allocation9 + $0x128] sm:$0xff] }
  0x90   :  { %553 = vmatprep.mubr.f32.mxu1 %v1592_v0  ;;  %1331 = vmatpush3.bf16.msra.mxu0 %v1330_v22  ;;  %v631_v0 = vld [vmem:[#allocation9 + $0x1b8] sm:$0xff]  ;;  %v1370_v45 = vpack.c.bf16 %v613_v48, %v612_v39  ;;  %v588_v22 = vld [vmem:[#allocation9 + $0x60] sm:$0xff]  ;;  %v1390_v39 = vpack.c.bf16 %v623_v38, %v622_v37  ;;  %v657_v48 = vld [vmem:[#allocation9 + $0x288] sm:$0xff] }
  0x91   :  { %1363 = vmatpush3.bf16.msra.mxu1 %v1362_v23  ;;  %1333 = vmatprep.subr.bf16.mxu0 %v1332_v24  ;;  %v1372_v51 = vpack.c.bf16 %v631_v0, %v630_v43  ;;  %v589_v23 = vld [vmem:[#allocation9 + $0x68] sm:$0xff]  ;;  %v620_v24 = vld [vmem:[#allocation9 + $0x160] sm:$0xff] }
  0x92   :  { %477 = vmatmul.mubr.f32.gmra.mrb[6].mxu0 %v1693_v10  ;;  %1365 = vmatprep.subr.bf16.mxu1 %v1364_v28  ;;  %v1354_v25 = vpack.c.bf16 %v589_v23, %v588_v22  ;;  %v1386_v27 = vpack.c.bf16 %v621_v26, %v620_v24  ;;  %v606_v28 = vld [vmem:[#allocation9 + $0xf0] sm:$0xff]  ;;  %v689_v43 = vld [vmem:[#allocation9 + $0x388] sm:$0xff]  ;;  %v660_v22 = vld [vmem:[#allocation9 + $0x2a0] sm:$0xff] }
  0x93   :  { %554 = vmatmul.mubr.f32.gmra.mrb[6].mxu1 %v1693_v10  ;;  %v1342_v10 = vpack.c.bf16 %v583_v49, %v582_v47  ;;  %v1356_v31 = vpack.c.bf16 %v607_v29, %v606_v28  ;;  %v1424_v0 = vpack.c.bf16 %v689_v43, %v688_v41  ;;  %v1708_v47 = vld [vmem:[#allocation8] sm:$0xff]  ;;  %v661_v23 = vld [vmem:[#allocation9 + $0x2a8] sm:$0xff]  ;;  %v692_v26 = vld [vmem:[#allocation9 + $0x3a0] sm:$0xff] }
  0x94   :  { %1335 = vmatpush3.bf16.msra.mxu0 %v1334_v34  ;;  %v591_v34 = vld [vmem:[#allocation9 + $0x78] sm:$0xff]  ;;  %v645_v37 = vld [vmem:[#allocation9 + $0x228] sm:$0xff]  ;;  %v676_v38 = vld [vmem:[#allocation9 + $0x320] sm:$0xff] }
  0x95   :  { %1367 = vmatpush3.bf16.msra.mxu1 %v1366_v35  ;;  %1337 = vmatprep.subr.bf16.mxu0 %v1336_v36  ;;  %v1388_v35 = vpack.c.bf16 %v639_v32, %v638_v30  ;;  %v1358_v36 = vpack.c.bf16 %v591_v34, %v590_v33  ;;  %v1398_v30 = vpack.c.bf16 %v643_v17, %v642_v16  ;;  %v677_v41 = vld [vmem:[#allocation9 + $0x328] sm:$0xff]  ;;  %v663_v43 = vld [vmem:[#allocation9 + $0x2b8] sm:$0xff]  ;;  %v682_v16 = vld [vmem:[#allocation9 + $0x350] sm:$0xff] }
  0x96   :  { %1369 = vmatprep.subr.bf16.mxu1 %v1368_v40  ;;  %v656_v40 = vld [vmem:[#allocation9 + $0x280] sm:$0xff] }
  0x97   :  { %v1392_v42 = vpack.c.bf16 %v657_v48, %v656_v40 }
  0x98   :  { %1339 = vmatpush3.bf16.msra.mxu0 %v1338_v44  ;;  %v212_v44 = vlaneseq }
  0x99   :  { %1371 = vmatpush3.bf16.msra.mxu1 %v1370_v45  ;;  %1341 = vmatprep.subr.bf16.mxu0 %v1340_v46 }
  0x9a   :  { %1373 = vmatprep.subr.bf16.mxu1 %v1372_v51  ;;  %v1705_v45 = vshrl.u32 %v212_v44, 7  ;;  %v695_v44 = vld [vmem:[#allocation9 + $0x3b8] sm:$0xff] }
  0x9c   :  { %1343 = vmatpush3.bf16.msra.mxu0 %v1342_v10  ;;  %v214_v46 = vsub.s32 0, %v1705_v45  ;;  %v222_v49 = vsub.s32 2, %v1705_v45  ;;  %v218_v50 = vsub.s32 1, %v1705_v45  ;;  %v226_v51 = vsub.s32 3, %v1705_v45 }
  0x9d   :  { %1375 = vmatpush3.bf16.msra.mxu1 %v1374_v57  ;;  %1345 = vmatprep.subr.bf16.mxu0 %v1344_v58 }
  0x9e   :  { %1377 = vmatprep.subr.bf16.mxu1 %v1376_v62  ;;  %v215_v52 = vrot.slane %v1708_v47, %v214_v46  ;;  %v223_v53 = vrot.slane %v1708_v47, %v222_v49  ;;  %v219_v54 = vrot.slane %v1708_v47, %v218_v50  ;;  %v227_v55 = vrot.slane %v1708_v47, %v226_v51 }
  0x9f   :  { %v1434_v51 = vpack.c.bf16 %v677_v41, %v676_v38  ;;  %v703_v38 = vld [vmem:[#allocation9 + $0x3f8] sm:$0xff] }
  0xa0   :  { %1347 = vmatpush3.bf16.msra.mxu0 %v1346_v5 }
  0xa1   :  { %1379 = vmatpush3.bf16.msra.mxu1 %v1378_v6  ;;  %1349 = vmatprep.subr.bf16.mxu0 %v1348_v7  ;;  %v690_v7 = vld [vmem:[#allocation9 + $0x390] sm:$0xff] }
  0xa2   :  { %1381 = vmatprep.subr.bf16.mxu1 %v1380_v12  ;;  %v1394_v12 = vpack.c.bf16 %v641_v60, %v640_v59  ;;  %v696_v59 = vld [vmem:[#allocation9 + $0x3c0] sm:$0xff]  ;;  %v697_v60 = vld [vmem:[#allocation9 + $0x3c8] sm:$0xff] }
  0xa3   :  { %v1440_v4 = vpack.c.bf16 %v697_v60, %v696_v59 }
  0xa4   :  { %1351 = vmatpush3.bf16.msra.mxu0 %v1350_v18  ;;  %v674_v18 = vld [vmem:[#allocation9 + $0x310] sm:$0xff] }
  0xa5   :  { %1383 = vmatpush3.bf16.msra.mxu1 %v1382_v19  ;;  %1353 = vmatprep.subr.bf16.mxu0 %v1352_v20  ;;  %v1428_v20 = vpack.c.bf16 %v691_v8, %v690_v7  ;;  %v667_v7 = vld [vmem:[#allocation9 + $0x2d8] sm:$0xff]  ;;  %v698_v8 = vld [vmem:[#allocation9 + $0x3d0] sm:$0xff] }
  0xa6   :  { %1385 = vmatprep.subr.bf16.mxu1 %v1384_v21  ;;  %v675_v21 = vld [vmem:[#allocation9 + $0x318] sm:$0xff] }
  0xa7   :  { %v1430_v34 = vpack.c.bf16 %v675_v21, %v674_v18  ;;  %v683_v18 = vld [vmem:[#allocation9 + $0x358] sm:$0xff]  ;;  %v700_v21 = vld [vmem:[#allocation9 + $0x3e0] sm:$0xff] }
  0xa8   :  { %1355 = vmatpush3.bf16.msra.mxu0 %v1354_v25 }
  0xa9   :  { %1387 = vmatpush3.bf16.msra.mxu1 %v1386_v27  ;;  %1357 = vmatprep.subr.bf16.mxu0 %v1356_v31  ;;  %v693_v27 = vld [vmem:[#allocation9 + $0x3a8] sm:$0xff] }
  0xaa   :  { %1389 = vmatprep.subr.bf16.mxu1 %v1388_v35  ;;  %v1400_v35 = vpack.c.bf16 %v661_v23, %v660_v22  ;;  %v1432_v48 = vpack.c.bf16 %v693_v27, %v692_v26  ;;  %v701_v22 = vld [vmem:[#allocation9 + $0x3e8] sm:$0xff]  ;;  %v230_v26 = vsub.s32 4, %v1705_v45  ;;  %v652_v27 = vld [vmem:[#allocation9 + $0x260] sm:$0xff] }
  0xac   :  { %1359 = vmatpush3.bf16.msra.mxu0 %v1358_v36  ;;  %v644_v36 = vld [vmem:[#allocation9 + $0x220] sm:$0xff] }
  0xad   :  { %1391 = vmatpush3.bf16.msra.mxu1 %v1390_v39  ;;  %1393 = vmatprep.subr.bf16.mxu0 %v1392_v42  ;;  %v662_v42 = vld [vmem:[#allocation9 + $0x2b0] sm:$0xff]  ;;  %v1402_v50 = vpack.c.bf16 %v645_v37, %v644_v36  ;;  %v242_v36 = vsub.s32 7, %v1705_v45 }
  0xae   :  { %1425 = vmatprep.subr.bf16.mxu1 %v1424_v0  ;;  %v694_v0 = vld [vmem:[#allocation9 + $0x3b0] sm:$0xff] }
  0xaf   :  { %v702_v37 = vld [vmem:[#allocation9 + $0x3f0] sm:$0xff] }
 0x141   :  { %v318_v56 = vpop.f32.mrb[0].mxu0 }
 0x142   :  { %v319_v10 = vadd.f32 %v318_v56, %v215_v52  ;;  %v395_v57 = vpop.f32.mrb[0].mxu1  ;;  %v320_v58 = vpop.f32.mrb[1].mxu0  ;;  %v1436_v56 = vpack.c.bf16 %v695_v44, %v694_v0 }
 0x143   :  { %v396_v62 = vadd.f32 %v395_v57, %v223_v53  ;;  %v321_v63 = vadd.f32 %v320_v58, %v219_v54  ;;  %v397_v1 = vpop.f32.mrb[1].mxu1  ;;  %v664_v57 = vld [vmem:[#allocation9 + $0x2c0] sm:$0xff]  ;;  %v665_v58 = vld [vmem:[#allocation9 + $0x2c8] sm:$0xff] }
 0x144   :  { %v560_v5 = vmax.f32 %v319_v10, 0.0  ;;  %v398_v6 = vadd.f32 %v397_v1, %v227_v55  ;;  %v679_v10 = vld [vmem:[#allocation9 + $0x338] sm:$0xff]  ;;  %v648_v1 = vld [vmem:[#allocation9 + $0x240] sm:$0xff] }
 0x145   :  { %v562_v9 = vmax.f32 %v396_v62, 0.0  ;;  %v561_v11 = vmax.f32 %v321_v63, 0.0  ;;  %v324_v28 = vpop.f32.mrb[2].mxu0  ;;  %v1408_v63 = vpack.c.bf16 %v665_v58, %v664_v57 }
 0x146   :  { %v563_v13 = vmax.f32 %v398_v6, 0.0  ;;  %v401_v19 = vpop.f32.mrb[2].mxu1  ;;  %v325_v31 = vadd.f32 %v324_v28, %v215_v52  ;;  %v326_v33 = vpop.f32.mrb[3].mxu0  ;;  %v1404_v52 = vpack.c.bf16 %v663_v43, %v662_v42  ;;  %v666_v6 = vld [vmem:[#allocation9 + $0x2d0] sm:$0xff]  ;;  %v653_v28 = vld [vmem:[#allocation9 + $0x268] sm:$0xff]  ;;  %v655_v43 = vld [vmem:[#allocation9 + $0x278] sm:$0xff] }
 0x147   :  { %768 = vmatprep.mubr.f32.mxu0 %v561_v11  ;;  %v402_v24 = vadd.f32 %v401_v19, %v223_v53  ;;  %v403_v25 = vpop.f32.mrb[3].mxu1  ;;  %v327_v39 = vadd.f32 %v326_v33, %v219_v54  ;;  %v646_v53 = vld [vmem:[#allocation9 + $0x230] sm:$0xff]  ;;  %v647_v54 = vld [vmem:[#allocation9 + $0x238] sm:$0xff]  ;;  %v1410_v11 = vpack.c.bf16 %v649_v2, %v648_v1  ;;  %v668_v19 = vld [vmem:[#allocation9 + $0x2e0] sm:$0xff]  ;;  %v234_v33 = vsub.s32 5, %v1705_v45 }
 0x148   :  { %843 = vmatprep.mubr.f32.mxu1 %v563_v13  ;;  %769 = vmatmul.mubr.f32.vlgmr.msra.gmra.mrb[8].mxu0 %v560_v5  ;;  %v404_v29 = vadd.f32 %v403_v25, %v227_v55  ;;  %v568_v46 = vmax.f32 %v325_v31, 0.0  ;;  %v678_v55 = vld [vmem:[#allocation9 + $0x330] sm:$0xff]  ;;  %v1406_v61 = vpack.c.bf16 %v647_v54, %v646_v53  ;;  %v681_v5 = vld [vmem:[#allocation9 + $0x348] sm:$0xff]  ;;  %v1412_v13 = vpack.c.bf16 %v667_v7, %v666_v6 }
 0x149   :  { %844 = vmatmul.mubr.f32.vlgmr.msra.gmra.mrb[8].mxu1 %v562_v9  ;;  %1395 = vmatpush3.bf16.msra.mxu0 %v1394_v12  ;;  %v570_v32 = vmax.f32 %v402_v24, 0.0  ;;  %v569_v49 = vmax.f32 %v327_v39, 0.0  ;;  %v1438_v62 = vpack.c.bf16 %v679_v10, %v678_v55  ;;  %v699_v9 = vld [vmem:[#allocation9 + $0x3d8] sm:$0xff]  ;;  %v1442_v12 = vpack.c.bf16 %v681_v5, %v680_v3  ;;  %v654_v42 = vld [vmem:[#allocation9 + $0x270] sm:$0xff] }
 0x14a   :  { %1427 = vmatpush3.bf16.msra.mxu1 %v1426_v14  ;;  %1397 = vmatprep.subr.bf16.mxu0 %v1396_v15  ;;  %v571_v40 = vmax.f32 %v404_v29, 0.0  ;;  %v650_v14 = vld [vmem:[#allocation9 + $0x250] sm:$0xff]  ;;  %v651_v15 = vld [vmem:[#allocation9 + $0x258] sm:$0xff]  ;;  %v1444_v17 = vpack.c.bf16 %v699_v9, %v698_v8  ;;  %v1446_v24 = vpack.c.bf16 %v683_v18, %v682_v16  ;;  %v684_v29 = vld [vmem:[#allocation9 + $0x360] sm:$0xff]  ;;  %v238_v31 = vsub.s32 6, %v1705_v45 }
 0x14b   :  { %1429 = vmatprep.subr.bf16.mxu1 %v1428_v20  ;;  %773 = vmatprep.mubr.f32.mxu0 %v569_v49  ;;  %v669_v20 = vld [vmem:[#allocation9 + $0x2e8] sm:$0xff]  ;;  %v1414_v23 = vpack.c.bf16 %v651_v15, %v650_v14  ;;  %v1418_v39 = vpack.c.bf16 %v653_v28, %v652_v27  ;;  %v235_v44 = vrot.slane %v1708_v47, %v234_v33  ;;  %v686_v49 = vld [vmem:[#allocation9 + $0x370] sm:$0xff]  ;;  %v687_v45 = vld [vmem:[#allocation9 + $0x378] sm:$0xff] }
 0x14c   :  { %848 = vmatprep.mubr.f32.mxu1 %v571_v40  ;;  %774 = vmatmul.mubr.f32.gmra.mrb[10].mxu0 %v568_v46  ;;  %v1416_v25 = vpack.c.bf16 %v669_v20, %v668_v19  ;;  %v231_v40 = vrot.slane %v1708_v47, %v230_v26  ;;  %v239_v0 = vrot.slane %v1708_v47, %v238_v31 }
 0x14d   :  { %1399 = vmatpush3.bf16.msra.mxu0 %v1398_v30  ;;  %849 = vmatmul.mubr.f32.gmra.mrb[10].mxu1 %v570_v32  ;;  %v1448_v30 = vpack.c.bf16 %v701_v22, %v700_v21  ;;  %v685_v32 = vld [vmem:[#allocation9 + $0x368] sm:$0xff]  ;;  %v1452_v46 = vpack.c.bf16 %v703_v38, %v702_v37 }
 0x14e   :  { %1431 = vmatpush3.bf16.msra.mxu1 %v1430_v34  ;;  %1401 = vmatprep.subr.bf16.mxu0 %v1400_v35  ;;  %v670_v34 = vld [vmem:[#allocation9 + $0x2f0] sm:$0xff]  ;;  %v671_v35 = vld [vmem:[#allocation9 + $0x2f8] sm:$0xff] }
 0x14f   :  { %1433 = vmatprep.subr.bf16.mxu1 %v1432_v48  ;;  %v1450_v48 = vpack.c.bf16 %v685_v32, %v684_v29  ;;  %v1420_v41 = vpack.c.bf16 %v671_v35, %v670_v34  ;;  %v1047_v35 = vld [vmem:[%s1747_s4] ss:$0 sm:$0xff] }
 0x151   :  { %1403 = vmatpush3.bf16.msra.mxu0 %v1402_v50  ;;  %v243_v50 = vrot.slane %v1708_v47, %v242_v36 }
 0x152   :  { %1435 = vmatpush3.bf16.msra.mxu1 %v1434_v51  ;;  %1405 = vmatprep.subr.bf16.mxu0 %v1404_v52  ;;  %v1422_v52 = vpack.c.bf16 %v655_v43, %v654_v42 }
 0x153   :  { %1437 = vmatprep.subr.bf16.mxu1 %v1436_v56  ;;  %v1454_v56 = vpack.c.bf16 %v687_v45, %v686_v49 }
 0x155   :  { %1407 = vmatpush3.bf16.msra.mxu0 %v1406_v61 }
 0x156   :  { %1439 = vmatpush3.bf16.msra.mxu1 %v1438_v62  ;;  %1409 = vmatprep.subr.bf16.mxu0 %v1408_v63 }
 0x157   :  { %1441 = vmatprep.subr.bf16.mxu1 %v1440_v4 }
 0x159   :  { %1411 = vmatpush3.bf16.msra.mxu0 %v1410_v11 }
 0x15a   :  { %1443 = vmatpush3.bf16.msra.mxu1 %v1442_v12  ;;  %1413 = vmatprep.subr.bf16.mxu0 %v1412_v13 }
 0x15b   :  { %1445 = vmatprep.subr.bf16.mxu1 %v1444_v17 }
 0x15d   :  { %1415 = vmatpush3.bf16.msra.mxu0 %v1414_v23 }
 0x15e   :  { %1447 = vmatpush3.bf16.msra.mxu1 %v1446_v24  ;;  %1417 = vmatprep.subr.bf16.mxu0 %v1416_v25 }
 0x15f   :  { %1449 = vmatprep.subr.bf16.mxu1 %v1448_v30 }
 0x161   :  { %v472_v51 = vpop.f32.mrb[4].mxu0  ;;  %1419 = vmatpush3.bf16.msra.mxu0 %v1418_v39 }
 0x162   :  { %v473_v53 = vadd.f32 %v472_v51, %v231_v40  ;;  %v549_v54 = vpop.f32.mrb[4].mxu1  ;;  %1451 = vmatpush3.bf16.msra.mxu1 %v1450_v48  ;;  %v474_v55 = vpop.f32.mrb[5].mxu0  ;;  %1421 = vmatprep.subr.bf16.mxu0 %v1420_v41 }
 0x163   :  { %v550_v10 = vadd.f32 %v549_v54, %v239_v0  ;;  %v475_v57 = vadd.f32 %v474_v55, %v235_v44  ;;  %v551_v58 = vpop.f32.mrb[5].mxu1  ;;  %1453 = vmatprep.subr.bf16.mxu1 %v1452_v46 }
 0x164   :  { %v552_v59 = vadd.f32 %v551_v58, %v243_v50  ;;  %v564_v63 = vmax.f32 %v473_v53, 0.0 }
 0x165   :  { %v566_v60 = vmax.f32 %v550_v10, 0.0  ;;  %v565_v61 = vmax.f32 %v475_v57, 0.0  ;;  %v478_v62 = vpop.f32.mrb[6].mxu0  ;;  %1423 = vmatpush3.bf16.msra.mxu0 %v1422_v52 }
 0x166   :  { %v567_v47 = vmax.f32 %v552_v59, 0.0  ;;  %v479_v1 = vadd.f32 %v478_v62, %v231_v40  ;;  %v555_v2 = vpop.f32.mrb[6].mxu1  ;;  %1455 = vmatpush3.bf16.msra.mxu1 %v1454_v56  ;;  %v480_v3 = vpop.f32.mrb[7].mxu0 }
 0x167   :  { %v556_v4 = vadd.f32 %v555_v2, %v239_v0  ;;  %v481_v5 = vadd.f32 %v480_v3, %v235_v44  ;;  %v557_v6 = vpop.f32.mrb[7].mxu1  ;;  %918 = vmatprep.mubr.f32.mxu0 %v565_v61 }
 0x168   :  { %v558_v7 = vadd.f32 %v557_v6, %v243_v50  ;;  %993 = vmatprep.mubr.f32.mxu1 %v567_v47  ;;  %919 = vmatmul.mubr.f32.vlgmr.msra.gmra.mrb[12].mxu0 %v564_v63  ;;  %v572_v11 = vmax.f32 %v479_v1, 0.0 }
 0x169   :  { %v574_v8 = vmax.f32 %v556_v4, 0.0  ;;  %v573_v9 = vmax.f32 %v481_v5, 0.0  ;;  %994 = vmatmul.mubr.f32.vlgmr.msra.gmra.mrb[12].mxu1 %v566_v60 }
 0x16a   :  { %v575_v12 = vmax.f32 %v558_v7, 0.0 }
 0x16b   :  { %923 = vmatprep.mubr.f32.mxu0 %v573_v9 }
 0x16c   :  { %998 = vmatprep.mubr.f32.mxu1 %v575_v12  ;;  %924 = vmatmul.mubr.f32.gmra.mrb[14].mxu0 %v572_v11 }
 0x16d   :  { %999 = vmatmul.mubr.f32.gmra.mrb[14].mxu1 %v574_v8 }
 0x21b   :  { %v1080_v13 = vpop.f32.mrb[8].mxu0 }
 0x21c   :  { %v1118_v14 = vpop.f32.mrb[8].mxu1  ;;  %v1081_v15 = vpop.f32.mrb[9].mxu0 }
 0x21d   :  { %v1082_v16 = vadd.f32 %v1081_v15, %v1080_v13  ;;  %v1119_v17 = vpop.f32.mrb[9].mxu1 }
 0x21e   :  { %v1120_v18 = vadd.f32 %v1119_v17, %v1118_v14 }
 0x21f   :  { %v1083_v23 = vpop.f32.mrb[10].mxu0 }
 0x220   :  { %v846_v19 = vadd.f32 %v1120_v18, %v1082_v16  ;;  %v1121_v20 = vpop.f32.mrb[10].mxu1  ;;  %v1084_v24 = vpop.f32.mrb[11].mxu0 }
 0x221   :  { %v1122_v21 = vpop.f32.mrb[11].mxu1  ;;  %v1085_v25 = vadd.f32 %v1084_v24, %v1083_v23 }
 0x222   :  { %v1123_v22 = vadd.f32 %v1122_v21, %v1121_v20 }
 0x224   :  { %v851_v26 = vadd.f32 %v1123_v22, %v1085_v25 }
 0x23b   :  { %v1156_v27 = vpop.f32.mrb[12].mxu0 }
 0x23c   :  { %v1194_v28 = vpop.f32.mrb[12].mxu1  ;;  %v1157_v29 = vpop.f32.mrb[13].mxu0 }
 0x23d   :  { %v1158_v30 = vadd.f32 %v1157_v29, %v1156_v27  ;;  %v1195_v31 = vpop.f32.mrb[13].mxu1 }
 0x23e   :  { %v1196_v32 = vadd.f32 %v1195_v31, %v1194_v28 }
 0x23f   :  { %v921_v33 = vadd.f32 %v1158_v30, %v846_v19  ;;  %v1159_v34 = vpop.f32.mrb[14].mxu0 }
 0x240   :  { %v1197_v36 = vpop.f32.mrb[14].mxu1  ;;  %v1160_v37 = vpop.f32.mrb[15].mxu0 }
 0x241   :  { %v996_v38 = vadd.f32 %v1196_v32, %v921_v33  ;;  %v1161_v39 = vadd.f32 %v1160_v37, %v1159_v34  ;;  %v1198_v40 = vpop.f32.mrb[15].mxu1 }
 0x242   :  { %v1199_v48 = vadd.f32 %v1198_v40, %v1197_v36 }
 0x243   :  { %v1024_v41 = vadd.f32 %v1047_v35, %v996_v38  ;;  %v926_v42 = vadd.f32 %v1161_v39, %v851_v26 }
 0x245   :  { %1026 = vst [vmem:[#allocation11] sm:$0xff] %v1024_v41  ;;  %v1001_v43 = vadd.f32 %v1199_v48, %v926_v42 }
 0x247   :  { %v1025_v0 = vadd.f32 %v1047_v35, %v1001_v43 }
 0x249   :  { %1027 = vst [vmem:[#allocation11 + $0x8] sm:$0xff] %v1025_v0 }
 0x24a   :  { %1565 = shalt.err (!%p1562_p8)
}
 0x24b   :  { %s1566_s23 = scalar_lea.hbm %s1748_s5, 256 }
 0x24c   :  { %p1567_p9 = scmp.ne.s32.totalorder %s1748_s5, %s1566_s23  ;;  %p1570_p10 = scmp.lt.u32.totalorder %s1566_s23, %s1748_s5 }
 0x24e   :  { %p1572_p11 = pnand %p1570_p10, %p1567_p9 }
 0x250   :  { %1575 = shalt.err (!%p1572_p11)
}
 0x251   :  { %1039 = dma.vmem_to_hbm [thread:$0]  %s1034_s20, 256, %s1748_s5, [#allocation5], %s1588_s1, %s1588_s1, %s1589_s17  }
 0x252   :  { %1582 = dma.done.wait [#allocation5], 256  }
 0x253   :  { %1583 = vsyncadd [#allocation5], 4294967040 }
 0x254   :  { %1043 = vsyncpa [#allocation4], 1 }
 0x255   :  { %1044 = vsyncpa [#allocation7], 1 }
 0x256   :  { %1045 = vsyncpa [#allocation10], 1 }
 0x257   :  { %1046 = vsyncpa [#allocation5], 1 }

</bundles_post_ra>
